<compile_context>
chip_gen: v5e
topology: v5e:2x2
jax: 0.10.0
libtpu: 0.0.40
codegen_flags: <defaults>
</compile_context>

<pallas_src>
import functools

import jax
import jax.numpy as jnp
from jax.experimental import pallas as pl
from jax.experimental.pallas import tpu as pltpu


def _cdiv(a, b):
    return -(-a // b)


def _cross_l1_kernel(a_ref, b_ref, o_ref, acc_ref, *,
                     total_rows, tile_rows, row_blocks, blocks_per_split):
    """Accumulate one (1, tile_rows, 128) strip of |output[i] - target[i+1]|.

    a_ref  : (1, tile_rows, 128) strip of output[i]
    b_ref  : (1, tile_rows, 128) strip of target[i+1] (shift via index_map)
    o_ref  : (1, 1, 8, 128)      per-(split, pair) partial sums
    acc_ref: (8, 128) f32        VMEM accumulator, persists across strips
    """
    j = pl.program_id(2)

    @pl.when(j == 0)
    def _init():
        acc_ref[...] = jnp.zeros_like(acc_ref)

    diff = jnp.abs(a_ref[0].astype(jnp.float32) -
                   b_ref[0].astype(jnp.float32))

    def _accumulate(d):
        if tile_rows % 8 == 0:
            # Pure vreg-wise VPU adds; no per-strip cross-sublane (XLU) work.
            acc_ref[...] += jnp.sum(d.reshape(tile_rows // 8, 8, 128), axis=0)
        else:
            # Tiny-image fallback (fewer than 8 rows per image).
            acc_ref[0:1, :] = acc_ref[0:1, :] + jnp.sum(d, axis=0,
                                                        keepdims=True)

    if total_rows % tile_rows != 0:
        # Only the globally-last row block of each image is partial; mask its
        # padded (garbage) rows there.  Every other strip is unmasked.
        blk = pl.program_id(0) * blocks_per_split + j
        is_tail = blk == row_blocks - 1

        @pl.when(jnp.logical_not(is_tail))
        def _full():
            _accumulate(diff)

        @pl.when(is_tail)
        def _tail():
            rows = (jax.lax.broadcasted_iota(jnp.int32, diff.shape, 0)
                    + blk * tile_rows)
            _accumulate(jnp.where(rows < total_rows, diff, 0.0))
    else:
        _accumulate(diff)

    @pl.when(j == pl.num_programs(2) - 1)
    def _flush():
        o_ref[...] = acc_ref[...].reshape(o_ref.shape)


def cross_loss(output, target, *, target_block_bytes=4 * 1024 * 1024):
    """mean(|output[:nb-1] - target[1:nb]|)  ==  CrossLoss.forward."""
    assert output.shape == target.shape, "output/target shape mismatch"
    nb, ch, row, col = output.shape
    assert nb >= 2, "CrossLoss needs batch size >= 2"
    m = ch * row * col
    itemsize = output.dtype.itemsize

    # Lane-dense layout: flatten each image, zero-pad to a multiple of 128
    # lanes (both tensors -> padded diffs are 0), view as rows of 128.
    m128 = _cdiv(m, 128)
    m_pad = m128 * 128
    a = output.reshape(nb, m)
    b = target.reshape(nb, m)
    if m_pad != m:
        a = jnp.pad(a, ((0, 0), (0, m_pad - m)))
        b = jnp.pad(b, ((0, 0), (0, m_pad - m)))
    a = a.reshape(nb, m128, 128)
    b = b.reshape(nb, m128, 128)

    # Row-strip tiling: ~4 MiB per input block (8192 f32 rows), sublane
    # aligned.  2 inputs x 2 pipeline buffers x 4 MiB = 16 MiB of VMEM.
    sub = 8 if itemsize >= 4 else (16 if itemsize == 2 else 32)
    target_rows = max(sub, target_block_bytes // (128 * itemsize))
    if m128 <= sub:
        tr = m128                                    # whole (tiny) image
    else:
        n_blk = max(2, _cdiv(m128, target_rows))
        n_blk += n_blk % 2                           # even -> clean 2-way split
        tr = min(m128, _cdiv(_cdiv(m128, n_blk), sub) * sub)
    n_rb = _cdiv(m128, tr)                           # row blocks per image
    # Leading 2-way split of each image's row blocks keeps both v7x
    # TensorCores busy even when nb == 2.  Only used when it adds no duplicate
    # work (even block count), so it is harmless on 1-TC chips.
    n_split = 2 if (n_rb >= 2 and n_rb % 2 == 0) else 1
    n_j = n_rb // n_split

    kernel = functools.partial(_cross_l1_kernel,
                               total_rows=m128, tile_rows=tr,
                               row_blocks=n_rb, blocks_per_split=n_j)

    cost = pl.CostEstimate(
        flops=3 * (nb - 1) * m,
        transcendentals=0,
        bytes_accessed=2 * (nb - 1) * m_pad * itemsize
                       + n_split * (nb - 1) * 8 * 128 * 4)

    partials = pl.pallas_call(
        kernel,
        out_shape=jax.ShapeDtypeStruct((n_split, nb - 1, 8, 128), jnp.float32),
        grid=(n_split, nb - 1, n_j),
        in_specs=[
            # output[i]   -> pair i
            pl.BlockSpec((1, tr, 128), lambda h, i, j: (i, h * n_j + j, 0)),
            # target[i+1] -> pair i (batch shift purely in the index_map)
            pl.BlockSpec((1, tr, 128), lambda h, i, j: (i + 1, h * n_j + j, 0)),
        ],
        out_specs=pl.BlockSpec((1, 1, 8, 128), lambda h, i, j: (h, i, 0, 0)),
        scratch_shapes=[pltpu.VMEM((8, 128), jnp.float32)],
        compiler_params=pltpu.CompilerParams(
            dimension_semantics=("parallel", "parallel", "arbitrary"),
            vmem_limit_bytes=40 * 1024 * 1024),
        cost_estimate=cost,
    )(a, b)

    # Tiny final reduction (n_split * (nb-1) * 8 * 128 partials) in plain JAX;
    # divisor uses the true element count (padding contributes exactly 0).
    return jnp.sum(partials) / ((nb - 1) * m)


if __name__ == "__main__":
    root = jax.random.PRNGKey(0)

    def _check(idx, shape, **kw):
        k1, k2 = jax.random.split(jax.random.fold_in(root, idx))
        o = jax.random.normal(k1, shape, jnp.float32)
        t = jax.random.normal(k2, shape, jnp.float32)
        loss = jax.jit(functools.partial(cross_loss, **kw))(o, t)
        jax.block_until_ready(loss)
        ref = jnp.mean(jnp.abs(o[:-1] - t[1:]))
        assert loss.shape == () and bool(jnp.isfinite(loss)), (shape, loss)
        assert jnp.allclose(loss, ref, rtol=1e-5, atol=1e-6), (shape, loss, ref)

    _check(0, (2, 4, 16, 16))    # nb=2, m128=8: single whole-image block
    _check(1, (3, 4, 32, 32))    # m128=32: 2-way split path (tr=16)
    _check(2, (4, 3, 16, 16))    # m128=6: tiny non-multiple-of-8 strip
    _check(3, (2, 2, 24, 24))    # m128=9: masked tail block (tr=8, 2 blocks)
    _check(4, (2, 3, 15, 17))    # m=765: lane-padding path (m % 128 != 0)
    # Force the multi-strip accumulation path (n_j >= 2) at a small scale.
    _check(5, (3, 4, 64, 64), target_block_bytes=16 * 1024)
    print("KERNEL_OK")
</pallas_src>

<mosaic_0001>
module attributes {stable_mosaic.version = 11 : i64} {
  func.func @_cross_l1_kernel(%arg0: i32, %arg1: i32, %arg2: i32, %arg3: memref<1x8x128xf32, #tpu.memory_space<vmem>>, %arg4: memref<1x8x128xf32, #tpu.memory_space<vmem>>, %arg5: memref<1x1x8x128xf32, #tpu.memory_space<vmem>>, %arg6: memref<8x128xf32, #tpu.memory_space<vmem>>) attributes {dimension_semantics = [#tpu.dimension_semantics<parallel>, #tpu.dimension_semantics<parallel>, #tpu.dimension_semantics<arbitrary>], iteration_bounds = array<i64: 1, 1, 1>, scalar_prefetch = 0 : i64, scratch_operands = 1 : i64, tpu.core_type = #tpu.core_type<tc>, window_params = [{transform_indices = @transform_0, window_bounds = array<i64: 1, 8, 128>}, {transform_indices = @transform_1, window_bounds = array<i64: 1, 8, 128>}, {transform_indices = @transform_2, window_bounds = array<i64: 1, 1, 8, 128>}]} {
    %c0_i32 = arith.constant 0 : i32
    %0 = arith.cmpi eq, %arg2, %c0_i32 : i32
    %1 = arith.extui %0 : i1 to i32
    %c0_i32_0 = arith.constant 0 : i32
    %2 = arith.cmpi ne, %1, %c0_i32_0 : i32
    scf.if %2 {
      %cst_12 = arith.constant 0.000000e+00 : f32
      %17 = vector.broadcast %cst_12 : f32 to vector<8x128xf32>
      %c0_13 = arith.constant 0 : index
      %c0_14 = arith.constant 0 : index
      %18 = vector.load %arg6[%c0_13, %c0_14] : memref<8x128xf32, #tpu.memory_space<vmem>>, vector<8x128xf32>
      tpu.vector_store %arg6[%c0_13, %c0_14], %17 {strides = array<i32>} : memref<8x128xf32, #tpu.memory_space<vmem>>, vector<8x128xf32>,
    } else {
    }
    %c0 = arith.constant 0 : index
    %c0_1 = arith.constant 0 : index
    %c0_2 = arith.constant 0 : index
    %3 = vector.load %arg3[%c0, %c0_1, %c0_2] : memref<1x8x128xf32, #tpu.memory_space<vmem>>, vector<1x8x128xf32>
    %4 = vector.shape_cast %3 : vector<1x8x128xf32> to vector<8x128xf32>
    %c0_3 = arith.constant 0 : index
    %c0_4 = arith.constant 0 : index
    %c0_5 = arith.constant 0 : index
    %5 = vector.load %arg4[%c0_3, %c0_4, %c0_5] : memref<1x8x128xf32, #tpu.memory_space<vmem>>, vector<1x8x128xf32>
    %6 = vector.shape_cast %5 : vector<1x8x128xf32> to vector<8x128xf32>
    %7 = arith.subf %4, %6 : vector<8x128xf32>
    %8 = math.absf %7 : vector<8x128xf32>
    %c0_6 = arith.constant 0 : index
    %c0_7 = arith.constant 0 : index
    %9 = vector.load %arg6[%c0_6, %c0_7] : memref<8x128xf32, #tpu.memory_space<vmem>>, vector<8x128xf32>
    %10 = vector.shape_cast %8 : vector<8x128xf32> to vector<1x8x128xf32>
    %cst = arith.constant dense<0.000000e+00> : vector<8x128xf32>
    %11 = vector.multi_reduction <add>, %10, %cst [0] : vector<1x8x128xf32> to vector<8x128xf32>
    %12 = arith.addf %9, %11 : vector<8x128xf32>
    %c0_8 = arith.constant 0 : index
    %c0_9 = arith.constant 0 : index
    %13 = vector.load %arg6[%c0_8, %c0_9] : memref<8x128xf32, #tpu.memory_space<vmem>>, vector<8x128xf32>
    tpu.vector_store %arg6[%c0_8, %c0_9], %12 {strides = array<i32>} : memref<8x128xf32, #tpu.memory_space<vmem>>, vector<8x128xf32>,
    %c0_i32_10 = arith.constant 0 : i32
    %14 = arith.cmpi eq, %arg2, %c0_i32_10 : i32
    %15 = arith.extui %14 : i1 to i32
    %c0_i32_11 = arith.constant 0 : i32
    %16 = arith.cmpi ne, %15, %c0_i32_11 : i32
    scf.if %16 {
      %c0_12 = arith.constant 0 : index
      %c0_13 = arith.constant 0 : index
      %17 = vector.load %arg6[%c0_12, %c0_13] : memref<8x128xf32, #tpu.memory_space<vmem>>, vector<8x128xf32>
      %18 = vector.shape_cast %17 : vector<8x128xf32> to vector<1x1x8x128xf32>
      %c0_14 = arith.constant 0 : index
      %c0_15 = arith.constant 0 : index
      %c0_16 = arith.constant 0 : index
      %c0_17 = arith.constant 0 : index
      %19 = vector.load %arg5[%c0_14, %c0_15, %c0_16, %c0_17] : memref<1x1x8x128xf32, #tpu.memory_space<vmem>>, vector<1x1x8x128xf32>
      tpu.vector_store %arg5[%c0_14, %c0_15, %c0_16, %c0_17], %18 {strides = array<i32>} : memref<1x1x8x128xf32, #tpu.memory_space<vmem>>, vector<1x1x8x128xf32>,
    } else {
    }
    return
  }
  func.func @transform_0(%arg0: i32, %arg1: i32, %arg2: i32) -> (i32, i32, i32) {
    %c1_i32 = arith.constant 1 : i32
    %0 = arith.muli %arg0, %c1_i32 : i32
    %1 = arith.addi %0, %arg2 : i32
    %c0_i32 = arith.constant 0 : i32
    %c0_i32_0 = arith.constant 0 : i32
    return %arg1, %1, %c0_i32 : i32, i32, i32
  }
  func.func @transform_1(%arg0: i32, %arg1: i32, %arg2: i32) -> (i32, i32, i32) {
    %c1_i32 = arith.constant 1 : i32
    %0 = arith.addi %arg1, %c1_i32 : i32
    %c1_i32_0 = arith.constant 1 : i32
    %1 = arith.muli %arg0, %c1_i32_0 : i32
    %2 = arith.addi %1, %arg2 : i32
    %c0_i32 = arith.constant 0 : i32
    %c0_i32_1 = arith.constant 0 : i32
    return %0, %2, %c0_i32 : i32, i32, i32
  }
  func.func @transform_2(%arg0: i32, %arg1: i32, %arg2: i32) -> (i32, i32, i32, i32) {
    %c0_i32 = arith.constant 0 : i32
    %c0_i32_0 = arith.constant 0 : i32
    %c0_i32_1 = arith.constant 0 : i32
    return %arg0, %arg1, %c0_i32, %c0_i32_0 : i32, i32, i32, i32
  }
}

</mosaic_0001>

<bundles_post_ra>
// kernel: cross_loss.1
= control target key start
LH: loop header
LB: loop body
LE: loop exit
PB: predicated region body
PF: predicated region fallthrough
CT: control target
= control target key end

     0   :  { %s121_s0 = inlined_call_operand.vmem [shape: f32[2,8,128], index: 0, kind: input, shape index: {}]   ;;  %s122_s1 = inlined_call_operand.vmem [shape: f32[2,8,128], index: 1, kind: input, shape index: {}]   ;;  %s123_s2 = inlined_call_operand.vmem [shape: f32[1,1,8,128], index: 2, kind: output, shape index: {}]  }
   0x1   :  { %v64_v0 = vld [vmem:[%s121_s0] sm:$0xff]  ;;  %v96_v1 = vld [vmem:[%s122_s1 + $0x8] sm:$0xff] }
   0x2   :  { %v66_v2 = vsub.f32 %v64_v0, %v96_v1 }
   0x4   :  { %v67_v3 = vand.u32 2147483647, %v66_v2 }
   0x6   :  { %76 = vst [vmem:[%s123_s2] sm:$0xff] %v67_v3 }

</bundles_post_ra>
